<compile_context>
chip_gen: v7x
topology: tpu7x:2x2x1
jax: 0.10.0
libtpu: 0.0.40
codegen_flags: <defaults>
</compile_context>

<pallas_src>
import functools

import jax
import jax.numpy as jnp
from jax.experimental import pallas as pl
from jax.experimental.pallas import tpu as pltpu

NUM_LABELS = 2
HID1 = 128
HID2 = 64
OUT_PAD = 128  # lane-dense padded output width


def _round_up(x, m):
    return (x + m - 1) // m * m


def _pad2d(x, rows, cols):
    r, c = x.shape
    if r == rows and c == cols:
        return x
    return jnp.zeros((rows, cols), x.dtype).at[:r, :c].set(x)


# --------------------------------------------------------------------------
# Kernel
# --------------------------------------------------------------------------
def bow_mlp_kernel(x_ref, w1_ref, b1_ref, w2_ref, b2_ref, w3_ref, b3_ref,
                   o_ref, acc_ref):
    k = pl.program_id(1)

    @pl.when(k == 0)
    def _():
        acc_ref[...] = jnp.zeros_like(acc_ref)

    # Layer-1 partial product over vocab tiles.  x arrives as f32 (no wrapper
    # cast copy); the bf16 cast happens in-register right before the MXU dot,
    # with f32 accumulation.
    acc_ref[...] += jnp.dot(x_ref[...].astype(jnp.bfloat16), w1_ref[...],
                            preferred_element_type=jnp.float32)

    @pl.when(k == pl.num_programs(1) - 1)
    def _():
        # hidden1 = relu(x @ W1 + b1)   (f32 epilogue: safe on v5e's VPU)
        h1 = jnp.maximum(acc_ref[...] + b1_ref[...], 0.0)
        # hidden2 = relu(h1 @ W2 + b2)
        h2 = jnp.dot(h1, w2_ref[...], preferred_element_type=jnp.float32)
        h2 = jnp.maximum(h2 + b2_ref[...], 0.0)
        # logits = h2 @ W3 + b3   (W3/b3 zero-padded to 128 lanes)
        out = jnp.dot(h2, w3_ref[...], preferred_element_type=jnp.float32)
        o_ref[...] = (out + b3_ref[...]).astype(o_ref.dtype)   # bf16 store


# --------------------------------------------------------------------------
# VMEM budgeting (generation-aware)
# --------------------------------------------------------------------------
def _vmem_cap_bytes():
    try:
        cap = int(pltpu.get_tpu_info().vmem_capacity_bytes)
    except Exception:
        cap = 128 << 20  # conservative assumption if the query is unavailable
    # Leave ~25% headroom for compiler-internal scratch:
    #   v7x (64 MiB)  -> ~48 MiB budget; v5e/v6e (128 MiB) -> ~96 MiB budget.
    return max(32 << 20, (cap * 3) // 4)


def _working_set_bytes(b_tile, k_tile):
    f32, bf16 = 4, 2
    x_bufs = 2 * b_tile * k_tile * f32        # double-buffered x tiles (f32)
    w1_bufs = 2 * k_tile * HID1 * bf16        # double-buffered W1 tiles (bf16)
    out_bufs = 2 * b_tile * OUT_PAD * bf16    # double-buffered bf16 output tiles
    acc = b_tile * HID1 * f32                 # accumulator scratch
    resident = (HID1 + HID1 * HID2 + HID2 + HID2 * OUT_PAD + OUT_PAD) * f32
    return x_bufs + w1_bufs + out_bufs + acc + resident


def _vmem_limit_bytes(b_tile, k_tile, cap):
    need = _working_set_bytes(b_tile, k_tile)
    return max(8 << 20, min(int(1.25 * need) + (4 << 20), cap))


# --------------------------------------------------------------------------
# One-time parameter preparation (outside the per-call hot path)
# --------------------------------------------------------------------------
def prepare_params(params, *, k_tile=2048):
    """bf16-cast + vocab-pad W1 and lane-pad W3/b3 once.

    Returns (prepared_params, k_tile_used).  Doing this here (instead of per
    forward call) removes the wrapper-side pad/cast HBM round-trip for the
    dominant streamed operand.
    """
    w1 = params["w1"]
    V = w1.shape[0]
    v_pad = _round_up(V, 128)
    kt = min(k_tile, v_pad)
    v_pad = _round_up(v_pad, kt)
    prepared = {
        "w1": _pad2d(w1, v_pad, HID1).astype(jnp.bfloat16),
        "b1": params["b1"],
        "w2": params["w2"],
        "b2": params["b2"],
        "w3": _pad2d(params["w3"], HID2, OUT_PAD),
        "b3": _pad2d(params["b3"], 1, OUT_PAD),
    }
    return prepared, kt


# --------------------------------------------------------------------------
# Forward pass
# --------------------------------------------------------------------------
@functools.partial(jax.jit, static_argnames=("b_tile", "k_tile"))
def bow_classifier(bow_vec, prepared, *, b_tile=512, k_tile=2048):
    """bow_vec: (B, V) float32.  prepared: output of prepare_params."""
    B, V = bow_vec.shape
    w1, b1, w2, b2, w3, b3 = (prepared["w1"], prepared["b1"], prepared["w2"],
                              prepared["b2"], prepared["w3"], prepared["b3"])

    v_pad = w1.shape[0]
    assert v_pad % k_tile == 0, "k_tile must match / divide prepare_params' padding"

    # ---- batch tile sizing (16-row pack for the bf16 output tile) -----------
    b_pad = _round_up(B, 16)
    b_tile = min(b_tile, b_pad)

    # Shrink tiles if they would blow the generation-aware VMEM budget
    # (matters on v7x's 64 MiB VMEM; any divisor of k_tile still divides v_pad).
    cap = _vmem_cap_bytes()
    while _working_set_bytes(b_tile, k_tile) > cap and k_tile > 512 and k_tile % 2 == 0:
        k_tile //= 2
    while _working_set_bytes(b_tile, k_tile) > cap and b_tile > 128 and b_tile % 16 == 0:
        b_tile //= 2

    # v7x megacore: make sure there are >= 2 batch tiles when the batch is big
    # enough, so the second TensorCore gets work (harmless on 1-TC chips).
    if b_pad // b_tile < 2 and b_pad >= 256:
        b_tile = _round_up(b_pad // 2, 8)
    b_pad = _round_up(b_pad, b_tile)

    # ---- input: f32, padded only if the shape is not already tile-aligned ---
    # (no dtype cast here -- the bf16 cast is fused into the kernel)
    x_p = _pad2d(bow_vec, b_pad, v_pad)

    grid = (b_pad // b_tile, v_pad // k_tile)
    vmem_resident = pl.BlockSpec(memory_space=pltpu.MemorySpace.VMEM)

    out_padded = pl.pallas_call(
        bow_mlp_kernel,
        out_shape=jax.ShapeDtypeStruct((b_pad, OUT_PAD), jnp.bfloat16),
        grid=grid,
        in_specs=[
            pl.BlockSpec((b_tile, k_tile), lambda b, k: (b, k)),   # x tile (f32)
            pl.BlockSpec((k_tile, HID1), lambda b, k: (k, 0)),     # W1 tile (bf16)
            vmem_resident,  # b1
            vmem_resident,  # w2
            vmem_resident,  # b2
            vmem_resident,  # w3 (padded)
            vmem_resident,  # b3 (padded)
        ],
        out_specs=pl.BlockSpec((b_tile, OUT_PAD), lambda b, k: (b, 0)),
        scratch_shapes=[pltpu.VMEM((b_tile, HID1), jnp.float32)],
        compiler_params=pltpu.CompilerParams(
            dimension_semantics=("parallel", "arbitrary"),
            vmem_limit_bytes=_vmem_limit_bytes(b_tile, k_tile, cap),
        ),
    )(x_p, w1, b1, w2, b2, w3, b3)

    return out_padded[:B, :NUM_LABELS].astype(jnp.float32)


# --------------------------------------------------------------------------
# Parameter init (mimics nn.Linear's U(-1/sqrt(fan_in), 1/sqrt(fan_in)))
# --------------------------------------------------------------------------
def init_params(key, vocab_size):
    """Weights stored as (in_features, out_features) = W_pytorch.T."""
    ks = jax.random.split(key, 6)

    def linear(kw, kb, fan_in, fan_out):
        bound = 1.0 / jnp.sqrt(fan_in)
        w = jax.random.uniform(kw, (fan_in, fan_out), jnp.float32, -bound, bound)
        b = jax.random.uniform(kb, (1, fan_out), jnp.float32, -bound, bound)
        return w, b

    w1, b1 = linear(ks[0], ks[1], vocab_size, HID1)
    w2, b2 = linear(ks[2], ks[3], HID1, HID2)
    w3, b3 = linear(ks[4], ks[5], HID2, NUM_LABELS)
    return {"w1": w1, "b1": b1, "w2": w2, "b2": b2, "w3": w3, "b3": b3}


if __name__ == "__main__":
    key = jax.random.PRNGKey(0)
    k_x, k_p = jax.random.split(key)

    batch = 8
    vocab_size = 256  # small synthetic vocab

    # Synthetic bag-of-words counts (non-negative floats), (B, V) like PyTorch.
    bow_vec = jax.random.randint(k_x, (batch, vocab_size), 0, 5).astype(jnp.float32)
    params = init_params(k_p, vocab_size)

    # k_tile=128 so the demo exercises the multi-step K accumulation path.
    prepared, kt = prepare_params(params, k_tile=128)
    logits = bow_classifier(bow_vec, prepared, b_tile=128, k_tile=kt)
    logits = jax.block_until_ready(logits)

    # Reference in plain JAX (same math; x/W1 bf16-rounded like the kernel).
    x_ref = bow_vec.astype(jnp.bfloat16).astype(jnp.float32)
    w1_ref = params["w1"].astype(jnp.bfloat16).astype(jnp.float32)
    h1 = jnp.maximum(x_ref @ w1_ref + params["b1"], 0.0)
    h2 = jnp.maximum(h1 @ params["w2"] + params["b2"], 0.0)
    ref = h2 @ params["w3"] + params["b3"]

    assert logits.shape == (batch, NUM_LABELS)
    # Kernel logits are written back as bf16 -> compare with bf16-level slack.
    assert jnp.allclose(logits, ref, atol=2e-2, rtol=2e-2), (
        float(jnp.max(jnp.abs(logits - ref))))

    print("KERNEL_OK")
</pallas_src>

<mosaic_0001>
module attributes {stable_mosaic.version = 11 : i64} {
  func.func @bow_mlp_kernel(%arg0: i32, %arg1: i32, %arg2: memref<16x128xf32, #tpu.memory_space<vmem>>, %arg3: memref<128x128xbf16, #tpu.memory_space<vmem>>, %arg4: memref<1x128xf32, #tpu.memory_space<vmem>>, %arg5: memref<128x64xf32, #tpu.memory_space<vmem>>, %arg6: memref<1x64xf32, #tpu.memory_space<vmem>>, %arg7: memref<64x128xf32, #tpu.memory_space<vmem>>, %arg8: memref<1x128xf32, #tpu.memory_space<vmem>>, %arg9: memref<16x128xbf16, #tpu.memory_space<vmem>>, %arg10: memref<16x128xf32, #tpu.memory_space<vmem>>) attributes {dimension_semantics = [#tpu.dimension_semantics<parallel>, #tpu.dimension_semantics<arbitrary>], iteration_bounds = array<i64: 1, 2>, scalar_prefetch = 0 : i64, scratch_operands = 1 : i64, tpu.core_type = #tpu.core_type<tc>, window_params = [{transform_indices = @transform_0, window_bounds = array<i64: 16, 128>}, {transform_indices = @transform_1, window_bounds = array<i64: 128, 128>}, {pipeline_mode = #tpu.pipeline_mode<synchronous>, transform_indices = @transform_2, window_bounds = array<i64: 1, 128>}, {pipeline_mode = #tpu.pipeline_mode<synchronous>, transform_indices = @transform_3, window_bounds = array<i64: 128, 64>}, {pipeline_mode = #tpu.pipeline_mode<synchronous>, transform_indices = @transform_4, window_bounds = array<i64: 1, 64>}, {pipeline_mode = #tpu.pipeline_mode<synchronous>, transform_indices = @transform_5, window_bounds = array<i64: 64, 128>}, {pipeline_mode = #tpu.pipeline_mode<synchronous>, transform_indices = @transform_6, window_bounds = array<i64: 1, 128>}, {transform_indices = @transform_7, window_bounds = array<i64: 16, 128>}]} {
    %c0_i32 = arith.constant 0 : i32
    %0 = arith.cmpi eq, %arg1, %c0_i32 : i32
    %1 = arith.extui %0 : i1 to i32
    %c0_i32_0 = arith.constant 0 : i32
    %2 = arith.cmpi ne, %1, %c0_i32_0 : i32
    scf.if %2 {
      %cst_9 = arith.constant 0.000000e+00 : f32
      %13 = vector.broadcast %cst_9 : f32 to vector<16x128xf32>
      %c0_10 = arith.constant 0 : index
      %c0_11 = arith.constant 0 : index
      %14 = vector.load %arg10[%c0_10, %c0_11] : memref<16x128xf32, #tpu.memory_space<vmem>>, vector<16x128xf32>
      tpu.vector_store %arg10[%c0_10, %c0_11], %13 {strides = array<i32>} : memref<16x128xf32, #tpu.memory_space<vmem>>, vector<16x128xf32>,
    } else {
    }
    %c0 = arith.constant 0 : index
    %c0_1 = arith.constant 0 : index
    %3 = vector.load %arg10[%c0, %c0_1] : memref<16x128xf32, #tpu.memory_space<vmem>>, vector<16x128xf32>
    %c0_2 = arith.constant 0 : index
    %c0_3 = arith.constant 0 : index
    %4 = vector.load %arg2[%c0_2, %c0_3] : memref<16x128xf32, #tpu.memory_space<vmem>>, vector<16x128xf32>
    %5 = arith.truncf %4 : vector<16x128xf32> to vector<16x128xbf16>
    %c0_4 = arith.constant 0 : index
    %c0_5 = arith.constant 0 : index
    %6 = vector.load %arg3[%c0_4, %c0_5] : memref<128x128xbf16, #tpu.memory_space<vmem>>, vector<128x128xbf16>
    %cst = arith.constant dense<0.000000e+00> : vector<16x128xf32>
    %7 = tpu.matmul %5, %6, %cst {dimension_numbers = #tpu.dot_dimension_numbers<[1], [0], [0], [1], [0, 0, 1, 1], [], []>} : vector<16x128xbf16>, vector<128x128xbf16>, vector<16x128xf32> -> vector<16x128xf32>
    %8 = arith.addf %3, %7 : vector<16x128xf32>
    %c0_6 = arith.constant 0 : index
    %c0_7 = arith.constant 0 : index
    %9 = vector.load %arg10[%c0_6, %c0_7] : memref<16x128xf32, #tpu.memory_space<vmem>>, vector<16x128xf32>
    tpu.vector_store %arg10[%c0_6, %c0_7], %8 {strides = array<i32>} : memref<16x128xf32, #tpu.memory_space<vmem>>, vector<16x128xf32>,
    %c1_i32 = arith.constant 1 : i32
    %10 = arith.cmpi eq, %arg1, %c1_i32 : i32
    %11 = arith.extui %10 : i1 to i32
    %c0_i32_8 = arith.constant 0 : i32
    %12 = arith.cmpi ne, %11, %c0_i32_8 : i32
    scf.if %12 {
      %c0_9 = arith.constant 0 : index
      %c0_10 = arith.constant 0 : index
      %13 = vector.load %arg10[%c0_9, %c0_10] : memref<16x128xf32, #tpu.memory_space<vmem>>, vector<16x128xf32>
      %c0_11 = arith.constant 0 : index
      %c0_12 = arith.constant 0 : index
      %14 = vector.load %arg4[%c0_11, %c0_12] : memref<1x128xf32, #tpu.memory_space<vmem>>, vector<1x128xf32>
      %15 = vector.broadcast %14 : vector<1x128xf32> to vector<16x128xf32>
      %16 = arith.addf %13, %15 : vector<16x128xf32>
      %cst_13 = arith.constant 0.000000e+00 : f32
      %17 = vector.broadcast %cst_13 : f32 to vector<16x128xf32>
      %18 = arith.maximumf %16, %17 : vector<16x128xf32>
      %c0_14 = arith.constant 0 : index
      %c0_15 = arith.constant 0 : index
      %19 = vector.load %arg5[%c0_14, %c0_15] : memref<128x64xf32, #tpu.memory_space<vmem>>, vector<128x64xf32>
      %cst_16 = arith.constant dense<0.000000e+00> : vector<16x64xf32>
      %20 = tpu.matmul %18, %19, %cst_16 {dimension_numbers = #tpu.dot_dimension_numbers<[1], [0], [0], [1], [0, 0, 1, 1], [], []>} : vector<16x128xf32>, vector<128x64xf32>, vector<16x64xf32> -> vector<16x64xf32>
      %c0_17 = arith.constant 0 : index
      %c0_18 = arith.constant 0 : index
      %21 = vector.load %arg6[%c0_17, %c0_18] : memref<1x64xf32, #tpu.memory_space<vmem>>, vector<1x64xf32>
      %22 = vector.broadcast %21 : vector<1x64xf32> to vector<16x64xf32>
      %23 = arith.addf %20, %22 : vector<16x64xf32>
      %cst_19 = arith.constant 0.000000e+00 : f32
      %24 = vector.broadcast %cst_19 : f32 to vector<16x64xf32>
      %25 = arith.maximumf %23, %24 : vector<16x64xf32>
      %c0_20 = arith.constant 0 : index
      %c0_21 = arith.constant 0 : index
      %26 = vector.load %arg7[%c0_20, %c0_21] : memref<64x128xf32, #tpu.memory_space<vmem>>, vector<64x128xf32>
      %cst_22 = arith.constant dense<0.000000e+00> : vector<16x128xf32>
      %27 = tpu.matmul %25, %26, %cst_22 {dimension_numbers = #tpu.dot_dimension_numbers<[1], [0], [0], [1], [0, 0, 1, 1], [], []>} : vector<16x64xf32>, vector<64x128xf32>, vector<16x128xf32> -> vector<16x128xf32>
      %c0_23 = arith.constant 0 : index
      %c0_24 = arith.constant 0 : index
      %28 = vector.load %arg8[%c0_23, %c0_24] : memref<1x128xf32, #tpu.memory_space<vmem>>, vector<1x128xf32>
      %29 = vector.broadcast %28 : vector<1x128xf32> to vector<16x128xf32>
      %30 = arith.addf %27, %29 : vector<16x128xf32>
      %31 = arith.truncf %30 : vector<16x128xf32> to vector<16x128xbf16>
      %c0_25 = arith.constant 0 : index
      %c0_26 = arith.constant 0 : index
      %32 = vector.load %arg9[%c0_25, %c0_26] : memref<16x128xbf16, #tpu.memory_space<vmem>>, vector<16x128xbf16>
      tpu.vector_store %arg9[%c0_25, %c0_26], %31 {strides = array<i32>} : memref<16x128xbf16, #tpu.memory_space<vmem>>, vector<16x128xbf16>,
    } else {
    }
    return
  }
  func.func @transform_0(%arg0: i32, %arg1: i32) -> (i32, i32) {
    %c0_i32 = arith.constant 0 : i32
    return %arg0, %arg1 : i32, i32
  }
  func.func @transform_1(%arg0: i32, %arg1: i32) -> (i32, i32) {
    %c0_i32 = arith.constant 0 : i32
    %c0_i32_0 = arith.constant 0 : i32
    return %arg1, %c0_i32 : i32, i32
  }
  func.func @transform_2(%arg0: i32, %arg1: i32) -> (i32, i32) {
    %c0_i32 = arith.constant 0 : i32
    %c0_i32_0 = arith.constant 0 : i32
    %c0_i32_1 = arith.constant 0 : i32
    return %c0_i32, %c0_i32_0 : i32, i32
  }
  func.func @transform_3(%arg0: i32, %arg1: i32) -> (i32, i32) {
    %c0_i32 = arith.constant 0 : i32
    %c0_i32_0 = arith.constant 0 : i32
    %c0_i32_1 = arith.constant 0 : i32
    return %c0_i32, %c0_i32_0 : i32, i32
  }
  func.func @transform_4(%arg0: i32, %arg1: i32) -> (i32, i32) {
    %c0_i32 = arith.constant 0 : i32
    %c0_i32_0 = arith.constant 0 : i32
    %c0_i32_1 = arith.constant 0 : i32
    return %c0_i32, %c0_i32_0 : i32, i32
  }
  func.func @transform_5(%arg0: i32, %arg1: i32) -> (i32, i32) {
    %c0_i32 = arith.constant 0 : i32
    %c0_i32_0 = arith.constant 0 : i32
    %c0_i32_1 = arith.constant 0 : i32
    return %c0_i32, %c0_i32_0 : i32, i32
  }
  func.func @transform_6(%arg0: i32, %arg1: i32) -> (i32, i32) {
    %c0_i32 = arith.constant 0 : i32
    %c0_i32_0 = arith.constant 0 : i32
    %c0_i32_1 = arith.constant 0 : i32
    return %c0_i32, %c0_i32_0 : i32, i32
  }
  func.func @transform_7(%arg0: i32, %arg1: i32) -> (i32, i32) {
    %c0_i32 = arith.constant 0 : i32
    %c0_i32_0 = arith.constant 0 : i32
    return %arg0, %c0_i32 : i32, i32
  }
}

</mosaic_0001>

<bundles_post_ra>
// kernel: bow_classifier.1
= control target key start
LH: loop header
LB: loop body
LE: loop exit
PB: predicated region body
PF: predicated region fallthrough
CT: control target
= control target key end

     0   :  { %s1115_s24 = smov 0   ;;  %s1117_s25 = smov 0   ;;  %s1283_s0 = inlined_call_operand.vmem [shape: f32[16,256], index: 0, kind: input, shape index: {}]   ;;  %s1284_s1 = inlined_call_operand.vmem [shape: bf16[256,128], index: 1, kind: input, shape index: {}]   ;;  %s1285_s2 = inlined_call_operand.vmem [shape: f32[1,128], index: 2, kind: input, shape index: {}]   ;;  %s1286_s3 = inlined_call_operand.vmem [shape: f32[128,64], index: 3, kind: input, shape index: {}]   ;;  %s1287_s4 = inlined_call_operand.vmem [shape: f32[1,64], index: 4, kind: input, shape index: {}]   ;;  %s1288_s5 = inlined_call_operand.vmem [shape: f32[64,128], index: 5, kind: input, shape index: {}]   ;;  %s1289_s6 = inlined_call_operand.vmem [shape: f32[1,128], index: 6, kind: input, shape index: {}]   ;;  %s1290_s7 = inlined_call_operand.vmem [shape: bf16[16,128], index: 7, kind: output, shape index: {}]  }
   0x1   :  { %s1119_s26 = smov 0   ;;  %s1121_s27 = smov 0  }
   0x2   :  { %s1123_s28 = smov 0  }
   0x3 LB: > { %s26_s29 = sadd.s32 1, %s1066_s27  ;;  %p45_p1 = scmp.ne.s32.totalorder %s1058_s25, %s1054_s24  ;;  %s1070_s28 = sphi %s1123_s28, %s17_s28   ;;  %s1066_s27 = sphi %s1121_s27, %s1294_s27   ;;  %s1062_s26 = sphi %s1119_s26, %s1293_s26   ;;  %s1058_s25 = sphi %s1117_s25, %s1292_s25   ;;  %s1054_s24 = sphi %s1115_s24, %s1291_s24  }
   0x4   : > { %p27_p0 = scmp.ge.s32.totalorder %s26_s29, 2  ;;  %p46_p2 = scmp.eq.s32.totalorder %s1070_s28, 0 }
   0x5   : > { %s38_s8 = sadd.s32 1, %s1058_s25  ;;  %p787_p5 = scmp.ge.s32.totalorder %s1070_s28, 2 }
   0x6   : > { %s1296_s29 = smov (%p27_p0, %s26_s29), 0  ;;  %p47_p3 = por %p46_p2, %p45_p1 }
   0x7   : > { %s34_s30 = ssub.s32 %s1066_s27, %s1296_s29  ;;  %243 = sbr.rel (%p787_p5) target bundleno = 21 (0x15), region = 36 }
   0x8   : > { %p36_p4 = scmp.eq.s32.totalorder %s34_s30, 0 }
   0xa   : > { %s1150_s9 = scalar_select %p36_p4, %s1058_s25, %s38_s8  }
   0xe   : > { %246 = sbr.rel (!%p47_p3) target bundleno = 21 (0x15), region = 40  ;;  %s248_s10 = sand.u32 (%p47_p3), 1, %s1058_s25  }
   0xf   : > { %s789_s11 = sshll.u32 (%p47_p3), %s1066_s27, 3  ;;  %s788_s12 = sshll.u32 (%p47_p3), %s248_s10, 4 }
  0x10   : > { %s255_s15 = scalar_lea.vmem (%p47_p3), %s1283_s0, %s789_s11  ;;  %s250_s16 = scalar_lea.vmem (%p47_p3), [#allocation3], %s788_s12 }
  0x11   : > { %v285_v0 = vld [vmem:[%s255_s15] sm:$0xff] (%p47_p3)  ;;  %v287_v1 = vld [vmem:[%s255_s15 + $0x10] sm:$0xff] (%p47_p3) }
  0x12   : > { %286 = vst [vmem:[%s250_s16] sm:$0xff] (%p47_p3), %v285_v0  ;;  %288 = vst [vmem:[%s250_s16 + $0x8] sm:$0xff] (%p47_p3), %v287_v1 }
  0x15 PF: > { %p790_p6 = scmp.ge.s32.totalorder %s1070_s28, 1  ;;  %p302_p7 = scmp.lt.s32.totalorder %s1070_s28, 3 }
  0x17   : > { %p303_p8 = pnand %p790_p6, %p302_p7 }
  0x18   : > { %s309_s17 = sand.u32 (!%p303_p8), 1, %s1054_s24   ;;  %s792_s18 = sshll.u32 (!%p303_p8), %s1062_s26, 4 }
  0x19   : > { %306 = sbr.rel (%p303_p8) target bundleno = 736 (0x2e0), region = 82  ;;  %s1162_s19 = sshll.u32 (!%p303_p8), %s309_s17, 4 }
  0x1a   : > { %p347_p9 = scmp.lt.s32.totalorder (!%p303_p8), %s792_s18, 31  ;;  %s311_s30 = scalar_lea.vmem (!%p303_p8), [#allocation3], %s1162_s19 }
  0x1b   : > { %p794_p10 = scmp.ne.s32.totalorder (!%p303_p8), %s1062_s26, 0 }
  0x20   : > { %s1298_s18 = smov (!%p347_p9, %s792_s18), 31  ;;  %362 = sbr.rel (%p794_p10) target bundleno = 39 (0x27), region = 90 }
  0x21   : > { %s793_s20 = sshll.u32 %s1298_s18, 2  ;;  %v1072_v2 = vmov (!%p794_p10), 0.0  }
  0x22   : > { %s1167_s23 = scalar_lea.vmem %s1284_s1, %s793_s20  ;;  %363 = vst [vmem:[#allocation2] sm:$0xff] (!%p794_p10), %v1072_v2  ;;  %364 = vst [vmem:[#allocation2 + $0x8] sm:$0xff] (!%p794_p10), %v1072_v2 }
  0x27 PF: > { %v1024_v3 = vld [vmem:[%s1167_s23] sm:$0xff]   ;;  %v1073_v4 = vmov 0.0   ;;  %v1025_v5 = vld [vmem:[%s1167_s23 + $0x8] sm:$0xff]   ;;  %vm1074_vm0 = vmmov 0   ;;  %v1026_v6 = vld [vmem:[%s1167_s23 + $0x10] sm:$0xff]   ;;  %p803_p11 = scmp.ne.s32.totalorder %s1062_s26, 1 }
  0x28   : > { %859 = vmatprep.subr.bf16.mxu0 %v1073_v4  ;;  %875 = vmatprep.mubr.msk.bf16.mxu0 %vm1074_vm0, %v1073_v4  ;;  %v1027_v7 = vld [vmem:[%s1167_s23 + $0x18] sm:$0xff]   ;;  %v1028_v8 = vld [vmem:[%s1167_s23 + $0x20] sm:$0xff]   ;;  %v1029_v9 = vld [vmem:[%s1167_s23 + $0x28] sm:$0xff]   ;;  %vm611_vm1 = vcmask (!%p803_p11), 523264  }
  0x29   : > { %860 = vmatpush3.bf16.msra.mxu0 %v1024_v3  ;;  %v1030_v10 = vld [vmem:[%s1167_s23 + $0x30] sm:$0xff]   ;;  %v1031_v11 = vld [vmem:[%s1167_s23 + $0x38] sm:$0xff]   ;;  %v365_v15 = vld [vmem:[#allocation2] sm:$0xff] }
  0x2a   : > { %861 = vmatprep.subr.bf16.mxu0 %v1073_v4  ;;  %v367_v12 = vld [vmem:[%s311_s30] sm:$0xff]  ;;  %v368_v13 = vld [vmem:[%s311_s30 + $0x8] sm:$0xff] }
  0x2b   : > { %v369_v14 = vpack.c.bf16 %v368_v13, %v367_v12  ;;  %v366_v17 = vld [vmem:[#allocation2 + $0x8] sm:$0xff]  ;;  %v496_v23 = vld [vmem:[%s1286_s3] sm:$0xff] (!%p803_p11)  ;;  %v498_v25 = vld [vmem:[%s1286_s3 + $0x10] sm:$0xff] (!%p803_p11) }
  0x2c   : > { %v497_v24 = vld [vmem:[%s1286_s3 + $0x8] sm:$0xff] (!%p803_p11)  ;;  %v499_v27 = vld [vmem:[%s1286_s3 + $0x18] sm:$0xff] (!%p803_p11)  ;;  %v500_v29 = vld [vmem:[%s1286_s3 + $0x20] sm:$0xff] (!%p803_p11) }
  0x2d   : > { %862 = vmatpush3.bf16.msra.mxu0 %v1025_v5  ;;  %v933_v26 = vpack.c.bf16 (!%p803_p11), %v497_v24, %v496_v23  ;;  %v937_v28 = vpack.c.bf16 (!%p803_p11), %v499_v27, %v498_v25  ;;  %v501_v30 = vld [vmem:[%s1286_s3 + $0x28] sm:$0xff] (!%p803_p11)  ;;  %v502_v32 = vld [vmem:[%s1286_s3 + $0x30] sm:$0xff] (!%p803_p11)  ;;  %v503_v33 = vld [vmem:[%s1286_s3 + $0x38] sm:$0xff] (!%p803_p11) }
  0x2e   : > { %863 = vmatprep.subr.bf16.mxu0 %v1073_v4  ;;  %v941_v31 = vpack.c.bf16 (!%p803_p11), %v501_v30, %v500_v29  ;;  %v804_v35 = vld [vmem:[%s1285_s2] ss:$0 sm:$0xff] (!%p803_p11)  ;;  %v597_v37 = vld [vmem:[%s1288_s5 + $0x8] sm:$0xff] (!%p803_p11)  ;;  %v598_v40 = vld [vmem:[%s1288_s5 + $0x10] sm:$0xff] (!%p803_p11)  ;;  %v945_v45 = vpack.c.bf16 (!%p803_p11), %v503_v33, %v502_v32 }
  0x2f   : > { %v596_v36 = vld [vmem:[%s1288_s5] sm:$0xff] (!%p803_p11)  ;;  %v599_v41 = vld [vmem:[%s1288_s5 + $0x18] sm:$0xff] (!%p803_p11)  ;;  %v601_v44 = vld [vmem:[%s1288_s5 + $0x28] sm:$0xff] (!%p803_p11) }
  0x30   : > { %v965_v39 = vpack.c.bf16 (!%p803_p11), %v597_v37, %v596_v36  ;;  %v969_v42 = vpack.c.bf16 (!%p803_p11), %v599_v41, %v598_v40  ;;  %v600_v43 = vld [vmem:[%s1288_s5 + $0x20] sm:$0xff] (!%p803_p11)  ;;  %v505_v48 = vld [vmem:[%s1286_s3 + $0x48] sm:$0xff] (!%p803_p11)  ;;  %v506_v51 = vld [vmem:[%s1286_s3 + $0x50] sm:$0xff] (!%p803_p11) }
  0x31   : > { %864 = vmatpush3.bf16.msra.mxu0 %v1026_v6  ;;  %v504_v47 = vld [vmem:[%s1286_s3 + $0x40] sm:$0xff] (!%p803_p11)  ;;  %v973_v49 = vpack.c.bf16 (!%p803_p11), %v601_v44, %v600_v43  ;;  %v507_v52 = vld [vmem:[%s1286_s3 + $0x58] sm:$0xff] (!%p803_p11)  ;;  %v509_v55 = vld [vmem:[%s1286_s3 + $0x68] sm:$0xff] (!%p803_p11) }
  0x32   : > { %865 = vmatprep.subr.bf16.mxu0 %v1073_v4  ;;  %966 = vmatprep.subr.bf16.mxu1 (!%p803_p11), %v965_v39  ;;  %v949_v50 = vpack.c.bf16 (!%p803_p11), %v505_v48, %v504_v47  ;;  %v953_v53 = vpack.c.bf16 (!%p803_p11), %v507_v52, %v506_v51  ;;  %v508_v54 = vld [vmem:[%s1286_s3 + $0x60] sm:$0xff] (!%p803_p11)  ;;  %v510_v57 = vld [vmem:[%s1286_s3 + $0x70] sm:$0xff] (!%p803_p11)  ;;  %v511_v58 = vld [vmem:[%s1286_s3 + $0x78] sm:$0xff] (!%p803_p11) }
  0x33   : > { %968 = vmatpush3.bf16.msra.mxu1 (!%p803_p11), %v965_v39  ;;  %v957_v56 = vpack.c.bf16 (!%p803_p11), %v509_v55, %v508_v54  ;;  %v961_v60 = vpack.c.bf16 (!%p803_p11), %v511_v58, %v510_v57  ;;  %v602_v63 = vld [vmem:[%s1288_s5 + $0x30] sm:$0xff] (!%p803_p11)  ;;  %v603_v0 = vld [vmem:[%s1288_s5 + $0x38] sm:$0xff] (!%p803_p11)  ;;  %v805_v2 = vld [vmem:[%s1287_s4] ss:$0 sm:$0xff] (!%p803_p11) }
  0x34   : > { %970 = vmatprep.subr.bf16.mxu1 (!%p803_p11), %v969_v42  ;;  %v977_v1 = vpack.c.bf16 (!%p803_p11), %v603_v0, %v602_v63 }
  0x35   : > { %866 = vmatpush3.bf16.msra.mxu0 %v1027_v7 }
  0x36   : > { %867 = vmatprep.subr.bf16.mxu0 %v1073_v4 }
  0x37   : > { %972 = vmatpush3.bf16.msra.mxu1 (!%p803_p11), %v969_v42 }
  0x38   : > { %974 = vmatprep.subr.bf16.mxu1 (!%p803_p11), %v973_v49 }
  0x39   : > { %868 = vmatpush3.bf16.msra.mxu0 %v1028_v8 }
  0x3a   : > { %869 = vmatprep.subr.bf16.mxu0 %v1073_v4 }
  0x3b   : > { %976 = vmatpush3.bf16.msra.mxu1 (!%p803_p11), %v973_v49 }
  0x3c   : > { %978 = vmatprep.subr.bf16.mxu1 (!%p803_p11), %v977_v1 }
  0x3d   : > { %870 = vmatpush3.bf16.msra.mxu0 %v1029_v9  ;;  %v806_v9 = vld [vmem:[%s1289_s6] ss:$0 sm:$0xff] (!%p803_p11) }
  0x3e   : > { %871 = vmatprep.subr.bf16.mxu0 %v1073_v4 }
  0x3f   : > { %980 = vmatpush3.bf16.msra.mxu1 (!%p803_p11), %v977_v1 }
  0x41   : > { %872 = vmatpush3.bf16.msra.mxu0 %v1030_v10 }
  0x42   : > { %873 = vmatprep.subr.bf16.mxu0 %v1073_v4 }
  0x45   : > { %874 = vmatpush3.bf16.msra.mxu0 %v1031_v11 }
  0x46   : > { %934 = vmatprep.subr.bf16.mxu0 (!%p803_p11), %v933_v26 }
  0x48   : > { %876 = vmatmul.mubr.bf16.vlgmr.msra.gmra.mrb[0].mxu0 %v369_v14 }
  0x49   : > { %936 = vmatpush3.bf16.msra.mxu0 (!%p803_p11), %v933_v26 }
  0x4a   : > { %938 = vmatprep.subr.bf16.mxu0 (!%p803_p11), %v937_v28 }
  0x4d   : > { %940 = vmatpush3.bf16.msra.mxu0 (!%p803_p11), %v937_v28 }
  0x4e   : > { %942 = vmatprep.subr.bf16.mxu0 (!%p803_p11), %v941_v31 }
  0x51   : > { %944 = vmatpush3.bf16.msra.mxu0 (!%p803_p11), %v941_v31 }
  0x52   : > { %946 = vmatprep.subr.bf16.mxu0 (!%p803_p11), %v945_v45 }
  0x55   : > { %948 = vmatpush3.bf16.msra.mxu0 (!%p803_p11), %v945_v45 }
  0x56   : > { %950 = vmatprep.subr.bf16.mxu0 (!%p803_p11), %v949_v50 }
  0x59   : > { %952 = vmatpush3.bf16.msra.mxu0 (!%p803_p11), %v949_v50 }
  0x5a   : > { %954 = vmatprep.subr.bf16.mxu0 (!%p803_p11), %v953_v53 }
  0x5d   : > { %956 = vmatpush3.bf16.msra.mxu0 (!%p803_p11), %v953_v53 }
  0x5e   : > { %958 = vmatprep.subr.bf16.mxu0 (!%p803_p11), %v957_v56 }
  0x61   : > { %960 = vmatpush3.bf16.msra.mxu0 (!%p803_p11), %v957_v56 }
  0x62   : > { %962 = vmatprep.subr.bf16.mxu0 (!%p803_p11), %v961_v60 }
  0x65   : > { %964 = vmatpush3.bf16.msra.mxu0 (!%p803_p11), %v961_v60 }
 0x11a   : > { %482 = sbr.rel (%p803_p11) target bundleno = 736 (0x2e0), region = 94 }
 0x11b   : > { %v468_v16 = vpop.f32.mrb[0].mxu0 }
 0x11c   : > { %v475_v18 = vadd.f32 %v468_v16, %v365_v15  ;;  %v877_v19 = vpop.f32.mrb[1].mxu0 }
 0x11d   : > { %v471_v20 = vpop.f32.mrb[2].mxu0 }
 0x11e   : > { %477 = vst [vmem:[#allocation2] sm:$0xff] %v475_v18  ;;  %v476_v21 = vadd.f32 %v471_v20, %v366_v17  ;;  %v878_v22 = vpop.f32.mrb[3].mxu0 }
 0x120   : > { %478 = vst [vmem:[#allocation2 + $0x8] sm:$0xff] %v476_v21 }
 0x125   : > { %v483_v34 = vld [vmem:[#allocation2] sm:$0xff] }
 0x126   : > { %v492_v38 = vadd.f32 %v804_v35, %v483_v34 }
 0x127   : > { %v484_v59 = vld [vmem:[#allocation2 + $0x8] sm:$0xff] }
 0x128   : > { %v494_v46 = vmax.f32 %v492_v38, 0.0  ;;  %v493_v61 = vadd.f32 %v804_v35, %v484_v59 }
 0x12a   : > { %911 = vmatprep.mubr.f32.mxu0 %v494_v46  ;;  %v495_v62 = vmax.f32 %v493_v61, 0.0 }
 0x12c   : > { %912 = vmatmul.mubr.f32.vlgmr.msra.gmra.mrb[0].mxu0 %v495_v62 }
 0x1ff   : > { %v913_v3 = vpop.f32.mrb[0].mxu0 }
 0x200   : > { %v591_v4 = vadd.f32 %v913_v3, %v805_v2  ;;  %v585_v5 = vpop.f32.mrb[1].mxu0 }
 0x201   : > { %v586_v6 = vadd.f32 %v805_v2, %v585_v5 }
 0x202   : > { %v595_v8 = vmax.f32 %v591_v4, 0.0 }
 0x203   : > { %v594_v7 = vmax.f32 %v586_v6, 0.0 }
 0x205   : > { %930 = vmatprep.mubr.msk.f32.mxu1 %vm611_vm1, %v594_v7 }
 0x206   : > { %931 = vmatmul.mubr.msk.f32.vlgmr.msra.gmra.mrb[0].mxu1 %vm611_vm1, %v595_v8 }
 0x2d9   : > { %v932_v10 = vpop.f32.mrb[0].mxu1 }
 0x2da   : > { %v690_v11 = vadd.f32 %v932_v10, %v806_v9  ;;  %v684_v12 = vpop.f32.mrb[1].mxu1 }
 0x2db   : > { %v685_v13 = vadd.f32 %v806_v9, %v684_v12 }
 0x2dd   : > { %v820_v14 = vpack.c.bf16 %v690_v11, %v685_v13 }
 0x2df   : > { %821 = vst [vmem:[%s1290_s7] sm:$0xff] %v820_v14  }
 0x2e0 PF: > { %s17_s28 = sadd.s32 1, %s1070_s28   ;;  %s1291_s24 = smov %s1058_s25 }
 0x2e1   : > { %p14_p12 = scmp.ge.s32.totalorder %s17_s28, 4   ;;  %s1292_s25 = smov %s1150_s9 }
 0x2e2   : > { %s1293_s26 = smov %s1066_s27  ;;  %s1294_s27 = smov %s1296_s29 }
 0x2e3   :  { %16 = sbr.rel (!%p14_p12) target bundleno = 3 (0x3), region = 132 }

</bundles_post_ra>
